<compile_context>
chip_gen: v5e
topology: v5e:2x2
jax: 0.10.0
libtpu: 0.0.40
codegen_flags: <defaults>
</compile_context>

<pallas_src>
import math
from functools import partial

import jax
import jax.numpy as jnp
from jax import lax
from jax.experimental import pallas as pl
from jax.experimental.pallas import tpu as pltpu


def lambda_init_fn(depth):
    return 0.8 - 0.6 * math.exp(-0.3 * depth)


# ----------------------------------------------------------------------------
# RoPE helpers (glue, plain JAX) -- matches lingua's real 2x2 rotation matrices
# ----------------------------------------------------------------------------
def precompute_freqs_cis(dim, end, theta):
    freqs = 1.0 / (theta ** (jnp.arange(0, dim, 2)[: dim // 2].astype(jnp.float32) / dim))
    t = jnp.arange(end, dtype=jnp.float32)
    freqs = jnp.outer(t, freqs)
    cos, sin = jnp.cos(freqs), jnp.sin(freqs)
    # (end, dim//2, 2, 2) rotation matrices [[cos, -sin], [sin, cos]]
    return jnp.stack([cos, -sin, sin, cos], axis=-1).reshape(end, dim // 2, 2, 2)


def apply_rotary_emb(xq, xk, freqs_cis):
    # xq: (B, S, Hq, D), xk: (B, S, Hkv, D), freqs_cis: (S, D//2, 2, 2)
    def rot(x):
        B, S, H, D = x.shape
        xr = x.reshape(B, S, H, D // 2, 1, 2)
        fc = freqs_cis.reshape(1, S, 1, D // 2, 2, 2)
        return (xr * fc).sum(-1).reshape(B, S, H, D)

    return rot(xq), rot(xk)


# ----------------------------------------------------------------------------
# Tile-size helper (largest divisor of `dim` that is <= cap and a multiple of
# `quantum`; falls back to the full dim, which is always a legal block size).
# ----------------------------------------------------------------------------
def _pick_tile(dim, cap, quantum):
    if dim <= cap:
        return dim
    t = (cap // quantum) * quantum
    while t >= quantum:
        if dim % t == 0:
            return t
        t -= quantum
    return dim


# ----------------------------------------------------------------------------
# Tiled Pallas matmul kernel (wq / wk / wv / wo projections)
# ----------------------------------------------------------------------------
def _matmul_kernel(x_ref, w_ref, o_ref, acc_ref):
    @pl.when(pl.program_id(2) == 0)
    def _():
        acc_ref[...] = jnp.zeros_like(acc_ref)

    acc_ref[...] += jnp.dot(x_ref[...], w_ref[...],
                            preferred_element_type=jnp.float32)
    o_ref[...] = acc_ref[...].astype(o_ref.dtype)


def pallas_matmul(x, w, *, tm_cap=256, tn_cap=256, tk_cap=512,
                  out_dtype=jnp.float32):
    # x: (M, K), w: (K, N) -> (M, N), f32 accumulation.
    M, K = x.shape
    K2, N = w.shape
    assert K == K2
    tm = _pick_tile(M, tm_cap, 8)
    tn = _pick_tile(N, tn_cap, 128)
    tk = _pick_tile(K, tk_cap, 128)
    grid = (M // tm, N // tn, K // tk)
    return pl.pallas_call(
        _matmul_kernel,
        out_shape=jax.ShapeDtypeStruct((M, N), out_dtype),
        grid=grid,
        in_specs=[
            pl.BlockSpec((tm, tk), lambda i, j, k: (i, k)),
            pl.BlockSpec((tk, tn), lambda i, j, k: (k, j)),
        ],
        out_specs=pl.BlockSpec((tm, tn), lambda i, j, k: (i, j)),
        scratch_shapes=[pltpu.VMEM((tm, tn), jnp.float32)],
        compiler_params=pltpu.CompilerParams(
            dimension_semantics=("parallel", "parallel", "arbitrary")),
    )(x, w)


# ----------------------------------------------------------------------------
# Differential-attention core kernel
#   grid = (batch, kv_head, q_tile); the hpg query heads of a kv group are
#   processed together; kv tiles are walked inside the kernel (causal skip).
# ----------------------------------------------------------------------------
def _diff_attn_kernel(lam_ref, q1_ref, q2_ref, k1_ref, k2_ref, v_ref, w_ref,
                      o_ref,
                      acc1_ref, acc2_ref, m1_ref, l1_ref, m2_ref, l2_ref,
                      *, scale, lambda_init, eps, tq, tk, hpg, hd):
    two_hd = 2 * hd
    M = hpg * tq                       # grouped-head "fat" matmul M
    qt = pl.program_id(2)

    # Stack the hpg query heads along the row (sublane) axis: (hpg*tq, hd).
    if hpg > 1:
        q1 = jnp.concatenate([q1_ref[i] for i in range(hpg)], axis=0)
        q2 = jnp.concatenate([q2_ref[i] for i in range(hpg)], axis=0)
    else:
        q1 = q1_ref[0]
        q2 = q2_ref[0]

    # Reset online-softmax state (scratch persists across grid steps).
    m1_ref[...] = jnp.full_like(m1_ref, -1e30)
    m2_ref[...] = jnp.full_like(m2_ref, -1e30)
    l1_ref[...] = jnp.zeros_like(l1_ref)
    l2_ref[...] = jnp.zeros_like(l2_ref)
    acc1_ref[...] = jnp.zeros_like(acc1_ref)
    acc2_ref[...] = jnp.zeros_like(acc2_ref)

    def online_update(s, v_blk, m_ref, l_ref, acc_ref):
        m_prev = m_ref[...]
        m_new = jnp.maximum(m_prev, jnp.max(s, axis=-1, keepdims=True))
        alpha = jnp.exp(m_prev - m_new)
        p = jnp.exp(s - m_new)
        l_ref[...] = alpha * l_ref[...] + jnp.sum(p, axis=-1, keepdims=True)
        acc_ref[...] = alpha * acc_ref[...] + jnp.dot(
            p, v_blk, preferred_element_type=jnp.float32)
        m_ref[...] = m_new

    def kv_step(j, mask):
        start = pl.multiple_of(j * tk, tk)
        k1b = k1_ref[pl.ds(start, tk), :]          # (tk, hd)
        k2b = k2_ref[pl.ds(start, tk), :]
        vb = v_ref[pl.ds(start, tk), :]            # (tk, 2*hd)
        s1 = jnp.dot(q1, k1b.T, preferred_element_type=jnp.float32) * scale
        s2 = jnp.dot(q2, k2b.T, preferred_element_type=jnp.float32) * scale
        if mask is not None:
            s1 = jnp.where(mask, s1, -1e30)
            s2 = jnp.where(mask, s2, -1e30)
        online_update(s1, vb, m1_ref, l1_ref, acc1_ref)
        online_update(s2, vb, m2_ref, l2_ref, acc2_ref)

    # Strictly-below-diagonal kv tiles: fully visible, no mask work.
    def body(j, carry):
        kv_step(j, None)
        return carry

    lax.fori_loop(0, qt, body, 0)

    # Diagonal kv tile: causal mask built from within-tile positions only
    # (tk == tq, so the mask is independent of the grid position).
    rows = lax.broadcasted_iota(jnp.int32, (M, tk), 0)
    qpos = lax.rem(rows, tq)
    cols = lax.broadcasted_iota(jnp.int32, (M, tk), 1)
    kv_step(qt, cols <= qpos)

    # Finalize: combine the two attentions, RMSNorm, output scaling.
    lam = lam_ref[0, 0]
    inv_l1 = pl.reciprocal(l1_ref[...], approx=True)
    inv_l2 = pl.reciprocal(l2_ref[...], approx=True)
    out = acc1_ref[...] * inv_l1 - lam * (acc2_ref[...] * inv_l2)

    ms = jnp.mean(out * out, axis=-1, keepdims=True)
    out = out * lax.rsqrt(ms + eps) * w_ref[...]
    out = out * (1.0 - lambda_init)

    # Scatter the hpg heads into the lane-dense (tq, hpg*2hd) output block.
    for i in range(hpg):
        o_ref[:, i * two_hd:(i + 1) * two_hd] = out[i * tq:(i + 1) * tq, :]


def diff_attention_forward(x, freq_cis, params, *, n_heads, n_kv_heads,
                           head_dim, lambda_init, tq_cap=256):
    B, S, dim = x.shape
    hd = head_dim // 2                 # "self.head_dim" in the torch module
    two_hd = 2 * hd
    assert n_heads % n_kv_heads == 0
    hpg = n_heads // n_kv_heads

    flat = x.reshape(B * S, dim).astype(jnp.float32)
    xq = pallas_matmul(flat, params["wq"].T).reshape(B, S, n_heads, two_hd)
    xk = pallas_matmul(flat, params["wk"].T).reshape(B, S, n_kv_heads, two_hd)
    xv = pallas_matmul(flat, params["wv"].T).reshape(B, S, n_kv_heads, two_hd)

    xq, xk = apply_rotary_emb(xq, xk, freq_cis[:S])

    xq = xq.reshape(B, S, n_heads, 2, hd)
    xk = xk.reshape(B, S, n_kv_heads, 2, hd)
    q1 = jnp.transpose(xq[:, :, :, 0], (0, 2, 1, 3))   # (B, Hq,  S, hd)
    q2 = jnp.transpose(xq[:, :, :, 1], (0, 2, 1, 3))
    k1 = jnp.transpose(xk[:, :, :, 0], (0, 2, 1, 3))   # (B, Hkv, S, hd)
    k2 = jnp.transpose(xk[:, :, :, 1], (0, 2, 1, 3))
    v = jnp.transpose(xv, (0, 2, 1, 3))                 # (B, Hkv, S, 2*hd)

    lam1 = jnp.exp(jnp.sum(params["lambda_q1"] * params["lambda_k1"]))
    lam2 = jnp.exp(jnp.sum(params["lambda_q2"] * params["lambda_k2"]))
    lambda_full = jnp.reshape(lam1 - lam2 + lambda_init, (1, 1)).astype(jnp.float32)

    subln_w = params["subln_w"].reshape(1, two_hd).astype(jnp.float32)

    tq = _pick_tile(S, tq_cap, 8)
    tk = tq                            # square kv tiles -> simple diagonal mask
    n_q_tiles = S // tq
    M = hpg * tq
    Dq = n_heads * two_hd

    scale = 1.0 / math.sqrt(hd)
    kern = partial(_diff_attn_kernel, scale=scale,
                   lambda_init=float(lambda_init), eps=1e-5,
                   tq=tq, tk=tk, hpg=hpg, hd=hd)

    # Lane-dense direct output layout (block last dim = hpg*2hd) when legal;
    # otherwise fall back to a per-kv-head layout and rearrange in XLA.
    lane_dense = ((hpg * two_hd) % 128 == 0) or (n_kv_heads == 1)
    if lane_dense:
        out_shape = jax.ShapeDtypeStruct((B, S, Dq), jnp.float32)
        out_spec = pl.BlockSpec((None, tq, hpg * two_hd),
                                lambda b, g, qt: (b, qt, g))
    else:
        out_shape = jax.ShapeDtypeStruct((B, n_kv_heads, S, hpg * two_hd),
                                         jnp.float32)
        out_spec = pl.BlockSpec((None, None, tq, hpg * two_hd),
                                lambda b, g, qt: (b, g, qt, 0))

    out = pl.pallas_call(
        kern,
        out_shape=out_shape,
        grid=(B, n_kv_heads, n_q_tiles),
        in_specs=[
            pl.BlockSpec((1, 1), lambda b, g, qt: (0, 0),
                         memory_space=pltpu.MemorySpace.SMEM),
            # q1/q2: hpg grouped heads x one q tile
            pl.BlockSpec((None, hpg, tq, hd), lambda b, g, qt: (b, g, qt, 0)),
            pl.BlockSpec((None, hpg, tq, hd), lambda b, g, qt: (b, g, qt, 0)),
            # k1/k2/v: full sequence for the kv head, resident across q tiles
            pl.BlockSpec((None, None, S, hd), lambda b, g, qt: (b, g, 0, 0)),
            pl.BlockSpec((None, None, S, hd), lambda b, g, qt: (b, g, 0, 0)),
            pl.BlockSpec((None, None, S, two_hd), lambda b, g, qt: (b, g, 0, 0)),
            pl.BlockSpec((1, two_hd), lambda b, g, qt: (0, 0)),
        ],
        out_specs=out_spec,
        scratch_shapes=[
            pltpu.VMEM((M, two_hd), jnp.float32),   # acc1
            pltpu.VMEM((M, two_hd), jnp.float32),   # acc2
            pltpu.VMEM((M, 1), jnp.float32),        # m1
            pltpu.VMEM((M, 1), jnp.float32),        # l1
            pltpu.VMEM((M, 1), jnp.float32),        # m2
            pltpu.VMEM((M, 1), jnp.float32),        # l2
        ],
        compiler_params=pltpu.CompilerParams(
            dimension_semantics=("parallel", "parallel", "arbitrary"),
            vmem_limit_bytes=48 * 1024 * 1024),
    )(lambda_full, q1, q2, k1, k2, v, subln_w)

    if lane_dense:
        attn = out.reshape(B * S, Dq)
    else:
        attn = (out.reshape(B, n_kv_heads, S, hpg, two_hd)
                   .transpose(0, 2, 1, 3, 4).reshape(B * S, Dq))

    y = pallas_matmul(attn, params["wo"].T).reshape(B, S, dim)
    return y


# ----------------------------------------------------------------------------
# Pure-JAX reference (for correctness check)
# ----------------------------------------------------------------------------
def reference_forward(x, freq_cis, params, *, n_heads, n_kv_heads, head_dim,
                      lambda_init):
    B, S, dim = x.shape
    hd = head_dim // 2
    hpg = n_heads // n_kv_heads

    xq = (x @ params["wq"].T).reshape(B, S, n_heads, 2 * hd)
    xk = (x @ params["wk"].T).reshape(B, S, n_kv_heads, 2 * hd)
    xv = (x @ params["wv"].T).reshape(B, S, n_kv_heads, 2 * hd)
    xq, xk = apply_rotary_emb(xq, xk, freq_cis[:S])

    xq = xq.reshape(B, S, n_heads, 2, hd)
    xk = xk.reshape(B, S, n_kv_heads, 2, hd)
    q1, q2 = xq[:, :, :, 0], xq[:, :, :, 1]
    k1, k2 = xk[:, :, :, 0], xk[:, :, :, 1]

    rep = lambda t: jnp.repeat(t, hpg, axis=2)
    k1r, k2r, vr = rep(k1), rep(k2), rep(xv)

    scale = 1.0 / math.sqrt(hd)
    causal = jnp.tril(jnp.ones((S, S), dtype=bool))

    def attn(q, k, v):
        s = jnp.einsum("bqhd,bkhd->bhqk", q, k) * scale
        s = jnp.where(causal[None, None], s, -jnp.inf)
        p = jax.nn.softmax(s, axis=-1)
        return jnp.einsum("bhqk,bkhd->bqhd", p, v)

    a1 = attn(q1, k1r, vr)
    a2 = attn(q2, k2r, vr)
    lam = (jnp.exp(jnp.sum(params["lambda_q1"] * params["lambda_k1"]))
           - jnp.exp(jnp.sum(params["lambda_q2"] * params["lambda_k2"]))
           + lambda_init)
    out = a1 - lam * a2
    ms = jnp.mean(out * out, axis=-1, keepdims=True)
    out = out * lax.rsqrt(ms + 1e-5) * params["subln_w"]
    out = out * (1.0 - lambda_init)
    out = out.reshape(B, S, n_heads * 2 * hd)
    return out @ params["wo"].T


if __name__ == "__main__":
    # Module config (small, consistent with DiffAttention's __init__)
    B, S = 2, 16
    dim = 128
    head_dim = 64                      # constructor arg -> internal half dim = 32
    n_heads, n_kv_heads = 4, 2
    rope_theta = 10000.0
    block_id = 0
    lam_init = lambda_init_fn(block_id)
    hd = head_dim // 2

    key = jax.random.PRNGKey(0)
    ks = jax.random.split(key, 8)
    std = dim ** (-0.5)
    params = {
        "wq": jax.random.normal(ks[0], (n_heads * 2 * hd, dim), jnp.float32) * std,
        "wk": jax.random.normal(ks[1], (n_kv_heads * 2 * hd, dim), jnp.float32) * std,
        "wv": jax.random.normal(ks[2], (n_kv_heads * 2 * hd, dim), jnp.float32) * std,
        "wo": jax.random.normal(ks[3], (dim, n_heads * 2 * hd), jnp.float32) * std,
        "lambda_q1": jax.random.normal(ks[4], (hd,), jnp.float32) * 0.1,
        "lambda_k1": jax.random.normal(ks[5], (hd,), jnp.float32) * 0.1,
        "lambda_q2": jax.random.normal(ks[6], (hd,), jnp.float32) * 0.1,
        "lambda_k2": jax.random.normal(ks[7], (hd,), jnp.float32) * 0.1,
        "subln_w": jnp.ones((2 * hd,), jnp.float32),
    }

    x = jax.random.normal(jax.random.PRNGKey(42), (B, S, dim), jnp.float32)
    freq_cis = precompute_freqs_cis(2 * hd, S, rope_theta)

    # tq_cap=8 forces 2 q tiles so the causal kv loop / diagonal-tile path is
    # exercised even at this tiny sequence length (production default: 256).
    y = diff_attention_forward(
        x, freq_cis, params,
        n_heads=n_heads, n_kv_heads=n_kv_heads, head_dim=head_dim,
        lambda_init=lam_init, tq_cap=8)
    y = jax.block_until_ready(y)

    y_ref = reference_forward(
        x, freq_cis, params,
        n_heads=n_heads, n_kv_heads=n_kv_heads, head_dim=head_dim,
        lambda_init=lam_init)
    max_err = float(jnp.max(jnp.abs(y - y_ref)))
    assert max_err < 5e-3, f"mismatch vs reference: {max_err}"

    print("KERNEL_OK")
</pallas_src>

<mosaic_0001>
module attributes {stable_mosaic.version = 11 : i64} {
  func.func @_matmul_kernel(%arg0: i32, %arg1: i32, %arg2: i32, %arg3: memref<32x128xf32, #tpu.memory_space<vmem>>, %arg4: memref<128x256xf32, #tpu.memory_space<vmem>>, %arg5: memref<32x256xf32, #tpu.memory_space<vmem>>, %arg6: memref<32x256xf32, #tpu.memory_space<vmem>>) attributes {dimension_semantics = [#tpu.dimension_semantics<parallel>, #tpu.dimension_semantics<parallel>, #tpu.dimension_semantics<arbitrary>], iteration_bounds = array<i64: 1, 1, 1>, scalar_prefetch = 0 : i64, scratch_operands = 1 : i64, tpu.core_type = #tpu.core_type<tc>, window_params = [{transform_indices = @transform_0, window_bounds = array<i64: 32, 128>}, {transform_indices = @transform_1, window_bounds = array<i64: 128, 256>}, {transform_indices = @transform_2, window_bounds = array<i64: 32, 256>}]} {
    %c0_i32 = arith.constant 0 : i32
    %0 = arith.cmpi eq, %arg2, %c0_i32 : i32
    %1 = arith.extui %0 : i1 to i32
    %c0_i32_0 = arith.constant 0 : i32
    %2 = arith.cmpi ne, %1, %c0_i32_0 : i32
    scf.if %2 {
      %cst_12 = arith.constant 0.000000e+00 : f32
      %11 = vector.broadcast %cst_12 : f32 to vector<32x256xf32>
      %c0_13 = arith.constant 0 : index
      %c0_14 = arith.constant 0 : index
      %12 = vector.load %arg6[%c0_13, %c0_14] : memref<32x256xf32, #tpu.memory_space<vmem>>, vector<32x256xf32>
      tpu.vector_store %arg6[%c0_13, %c0_14], %11 {strides = array<i32>} : memref<32x256xf32, #tpu.memory_space<vmem>>, vector<32x256xf32>,
    } else {
    }
    %c0 = arith.constant 0 : index
    %c0_1 = arith.constant 0 : index
    %3 = vector.load %arg6[%c0, %c0_1] : memref<32x256xf32, #tpu.memory_space<vmem>>, vector<32x256xf32>
    %c0_2 = arith.constant 0 : index
    %c0_3 = arith.constant 0 : index
    %4 = vector.load %arg3[%c0_2, %c0_3] : memref<32x128xf32, #tpu.memory_space<vmem>>, vector<32x128xf32>
    %c0_4 = arith.constant 0 : index
    %c0_5 = arith.constant 0 : index
    %5 = vector.load %arg4[%c0_4, %c0_5] : memref<128x256xf32, #tpu.memory_space<vmem>>, vector<128x256xf32>
    %cst = arith.constant dense<0.000000e+00> : vector<32x256xf32>
    %6 = tpu.matmul %4, %5, %cst {dimension_numbers = #tpu.dot_dimension_numbers<[1], [0], [0], [1], [0, 0, 1, 1], [], []>} : vector<32x128xf32>, vector<128x256xf32>, vector<32x256xf32> -> vector<32x256xf32>
    %7 = arith.addf %3, %6 : vector<32x256xf32>
    %c0_6 = arith.constant 0 : index
    %c0_7 = arith.constant 0 : index
    %8 = vector.load %arg6[%c0_6, %c0_7] : memref<32x256xf32, #tpu.memory_space<vmem>>, vector<32x256xf32>
    tpu.vector_store %arg6[%c0_6, %c0_7], %7 {strides = array<i32>} : memref<32x256xf32, #tpu.memory_space<vmem>>, vector<32x256xf32>,
    %c0_8 = arith.constant 0 : index
    %c0_9 = arith.constant 0 : index
    %9 = vector.load %arg6[%c0_8, %c0_9] : memref<32x256xf32, #tpu.memory_space<vmem>>, vector<32x256xf32>
    %c0_10 = arith.constant 0 : index
    %c0_11 = arith.constant 0 : index
    %10 = vector.load %arg5[%c0_10, %c0_11] : memref<32x256xf32, #tpu.memory_space<vmem>>, vector<32x256xf32>
    tpu.vector_store %arg5[%c0_10, %c0_11], %9 {strides = array<i32>} : memref<32x256xf32, #tpu.memory_space<vmem>>, vector<32x256xf32>,
    return
  }
  func.func @transform_0(%arg0: i32, %arg1: i32, %arg2: i32) -> (i32, i32) {
    %c0_i32 = arith.constant 0 : i32
    return %arg0, %arg2 : i32, i32
  }
  func.func @transform_1(%arg0: i32, %arg1: i32, %arg2: i32) -> (i32, i32) {
    %c0_i32 = arith.constant 0 : i32
    return %arg2, %arg1 : i32, i32
  }
  func.func @transform_2(%arg0: i32, %arg1: i32, %arg2: i32) -> (i32, i32) {
    %c0_i32 = arith.constant 0 : i32
    return %arg0, %arg1 : i32, i32
  }
}

</mosaic_0001>

<bundles_post_ra>
// kernel: tpu_custom_call.1
= control target key start
LH: loop header
LB: loop body
LE: loop exit
PB: predicated region body
PF: predicated region fallthrough
CT: control target
= control target key end

     0   :  { %7 = vsyncpa [#allocation4], 0  ;;  %s364_s0 = inlined_call_operand.hbm [shape: f32[32,128], index: 0, kind: input, shape index: {}]   ;;  %s365_s1 = inlined_call_operand.hbm [shape: f32[128,256], index: 1, kind: input, shape index: {}]   ;;  %s366_s2 = inlined_call_operand.hbm [shape: f32[32,256], index: 2, kind: output, shape index: {}]  }
   0x1   :  { %8 = vsyncpa [#allocation7], 0 }
   0x2   :  { %9 = vsyncpa [#allocation5], 0  ;;  %s14_s11 = sshll.u32 %s364_s0, 4  ;;  %s327_s12 = smov [#allocation3]   ;;  %s15_s11 = int_to_ptr.hbm [resolvable:$true] %s14_s11 }
   0x3   :  { %s16_s13 = sshll.u32 %s327_s12, 4  ;;  %s27_s16 = sshll.u32 %s365_s1, 4  ;;  %s17_s13 = int_to_ptr.vmem [resolvable:$true] %s16_s13  ;;  %s28_s16 = int_to_ptr.hbm [resolvable:$true] %s27_s16 }
   0x4   :  { %s328_s17 = smov 128   ;;  %s329_s18 = smov 8  }
   0x5   :  { %22 = dma.hbm_to_vmem [thread:$0]  %s15_s11, 512, %s17_s13, [#allocation4], %s328_s17, %s328_s17, %s329_s18  }
   0x6   :  { %s330_s19 = smov [#allocation6]   ;;  %s331_s21 = smov 256  }
   0x7   :  { %s29_s20 = sshll.u32 %s330_s19, 4  ;;  %s332_s22 = smov 16   ;;  %s30_s20 = int_to_ptr.vmem [resolvable:$true] %s29_s20 }
   0x8   :  { %35 = dma.hbm_to_vmem [thread:$0]  %s28_s16, 4096, %s30_s20, [#allocation7], %s331_s21, %s331_s21, %s332_s22  }
   0x9   :  { %321 = dma.done.wait [#allocation4], 512  }
   0xa   :  { %322 = vsyncadd [#allocation4], 4294966784 }
   0xb   :  { %323 = dma.done.wait [#allocation7], 4096  }
   0xc   :  { %324 = vsyncadd [#allocation7], 4294963200  ;;  %v98_v0 = vld [vmem:[#allocation6 + $0xf0] sm:$0xff]  ;;  %v99_v1 = vld [vmem:[#allocation6 + $0xf8] sm:$0xff]  ;;  %s333_s0 = smov [#allocation8]   ;;  %s196_s25 = sshll.u32 %s366_s2, 4  ;;  %s197_s25 = int_to_ptr.hbm [resolvable:$true] %s196_s25 }
   0xd   :  { %v96_v2 = vld [vmem:[#allocation6 + $0xe0] sm:$0xff]  ;;  %210 = vmatpush.msra.mxu2 %v98_v0  ;;  %226 = vmatpush.msra.mxu3 %v99_v1  ;;  %v97_v3 = vld [vmem:[#allocation6 + $0xe8] sm:$0xff]  ;;  %v94_v4 = vld [vmem:[#allocation6 + $0xd0] sm:$0xff]  ;;  %s194_s1 = sshll.u32 %s333_s0, 4  ;;  %s195_s1 = int_to_ptr.vmem [resolvable:$true] %s194_s1 }
   0xe   :  { %v95_v5 = vld [vmem:[#allocation6 + $0xd8] sm:$0xff]  ;;  %100 = vmatpush.msra.mxu0 %v98_v0  ;;  %129 = vmatpush.msra.mxu1 %v99_v1  ;;  %v92_v6 = vld [vmem:[#allocation6 + $0xc0] sm:$0xff]  ;;  %v93_v7 = vld [vmem:[#allocation6 + $0xc8] sm:$0xff] }
   0xf   :  { %211 = vmatpush.msra.mxu2 %v96_v2  ;;  %227 = vmatpush.msra.mxu3 %v97_v3  ;;  %v90_v8 = vld [vmem:[#allocation6 + $0xb0] sm:$0xff]  ;;  %v91_v9 = vld [vmem:[#allocation6 + $0xb8] sm:$0xff]  ;;  %v88_v10 = vld [vmem:[#allocation6 + $0xa0] sm:$0xff] }
  0x10   :  { %101 = vmatpush.msra.mxu0 %v96_v2  ;;  %130 = vmatpush.msra.mxu1 %v97_v3  ;;  %v89_v11 = vld [vmem:[#allocation6 + $0xa8] sm:$0xff]  ;;  %v86_v12 = vld [vmem:[#allocation6 + $0x90] sm:$0xff]  ;;  %v87_v13 = vld [vmem:[#allocation6 + $0x98] sm:$0xff] }
  0x11   :  { %212 = vmatpush.msra.mxu2 %v94_v4  ;;  %228 = vmatpush.msra.mxu3 %v95_v5  ;;  %v84_v14 = vld [vmem:[#allocation6 + $0x80] sm:$0xff]  ;;  %v85_v15 = vld [vmem:[#allocation6 + $0x88] sm:$0xff]  ;;  %v82_v16 = vld [vmem:[#allocation6 + $0x70] sm:$0xff] }
  0x12   :  { %102 = vmatpush.msra.mxu0 %v94_v4  ;;  %131 = vmatpush.msra.mxu1 %v95_v5  ;;  %v83_v17 = vld [vmem:[#allocation6 + $0x78] sm:$0xff]  ;;  %v80_v18 = vld [vmem:[#allocation6 + $0x60] sm:$0xff]  ;;  %v81_v19 = vld [vmem:[#allocation6 + $0x68] sm:$0xff] }
  0x13   :  { %213 = vmatpush.msra.mxu2 %v92_v6  ;;  %229 = vmatpush.msra.mxu3 %v93_v7  ;;  %v78_v20 = vld [vmem:[#allocation6 + $0x50] sm:$0xff]  ;;  %v79_v21 = vld [vmem:[#allocation6 + $0x58] sm:$0xff]  ;;  %v76_v22 = vld [vmem:[#allocation6 + $0x40] sm:$0xff] }
  0x14   :  { %103 = vmatpush.msra.mxu0 %v92_v6  ;;  %132 = vmatpush.msra.mxu1 %v93_v7  ;;  %v77_v23 = vld [vmem:[#allocation6 + $0x48] sm:$0xff]  ;;  %v74_v24 = vld [vmem:[#allocation6 + $0x30] sm:$0xff]  ;;  %v75_v25 = vld [vmem:[#allocation6 + $0x38] sm:$0xff] }
  0x15   :  { %214 = vmatpush.msra.mxu2 %v90_v8  ;;  %230 = vmatpush.msra.mxu3 %v91_v9  ;;  %v72_v26 = vld [vmem:[#allocation6 + $0x20] sm:$0xff]  ;;  %v73_v27 = vld [vmem:[#allocation6 + $0x28] sm:$0xff]  ;;  %v70_v28 = vld [vmem:[#allocation6 + $0x10] sm:$0xff] }
  0x16   :  { %104 = vmatpush.msra.mxu0 %v90_v8  ;;  %133 = vmatpush.msra.mxu1 %v91_v9  ;;  %v71_v29 = vld [vmem:[#allocation6 + $0x18] sm:$0xff]  ;;  %v68_v30 = vld [vmem:[#allocation6] sm:$0xff]  ;;  %v69_v31 = vld [vmem:[#allocation6 + $0x8] sm:$0xff] }
  0x17   :  { %215 = vmatpush.msra.mxu2 %v88_v10  ;;  %231 = vmatpush.msra.mxu3 %v89_v11  ;;  %v66_v32 = vld [vmem:[#allocation3 + $0x10] sm:$0xff]  ;;  %v64_v33 = vld [vmem:[#allocation3] sm:$0xff]  ;;  %v67_v34 = vld [vmem:[#allocation3 + $0x18] sm:$0xff] }
  0x18   :  { %105 = vmatpush.msra.mxu0 %v88_v10  ;;  %134 = vmatpush.msra.mxu1 %v89_v11  ;;  %v65_v35 = vld [vmem:[#allocation3 + $0x8] sm:$0xff] }
  0x19   :  { %216 = vmatpush.msra.mxu2 %v86_v12  ;;  %232 = vmatpush.msra.mxu3 %v87_v13 }
  0x1a   :  { %106 = vmatpush.msra.mxu0 %v86_v12  ;;  %135 = vmatpush.msra.mxu1 %v87_v13 }
  0x1b   :  { %217 = vmatpush.msra.mxu2 %v84_v14  ;;  %233 = vmatpush.msra.mxu3 %v85_v15 }
  0x1c   :  { %107 = vmatpush.msra.mxu0 %v84_v14  ;;  %136 = vmatpush.msra.mxu1 %v85_v15 }
  0x1d   :  { %218 = vmatpush.msra.mxu2 %v82_v16  ;;  %234 = vmatpush.msra.mxu3 %v83_v17 }
  0x1e   :  { %108 = vmatpush.msra.mxu0 %v82_v16  ;;  %137 = vmatpush.msra.mxu1 %v83_v17 }
  0x1f   :  { %219 = vmatpush.msra.mxu2 %v80_v18  ;;  %235 = vmatpush.msra.mxu3 %v81_v19 }
  0x20   :  { %109 = vmatpush.msra.mxu0 %v80_v18  ;;  %138 = vmatpush.msra.mxu1 %v81_v19 }
  0x21   :  { %220 = vmatpush.msra.mxu2 %v78_v20  ;;  %236 = vmatpush.msra.mxu3 %v79_v21 }
  0x22   :  { %110 = vmatpush.msra.mxu0 %v78_v20  ;;  %139 = vmatpush.msra.mxu1 %v79_v21 }
  0x23   :  { %221 = vmatpush.msra.mxu2 %v76_v22  ;;  %237 = vmatpush.msra.mxu3 %v77_v23 }
  0x24   :  { %111 = vmatpush.msra.mxu0 %v76_v22  ;;  %140 = vmatpush.msra.mxu1 %v77_v23 }
  0x25   :  { %222 = vmatpush.msra.mxu2 %v74_v24  ;;  %238 = vmatpush.msra.mxu3 %v75_v25 }
  0x26   :  { %112 = vmatpush.msra.mxu0 %v74_v24  ;;  %141 = vmatpush.msra.mxu1 %v75_v25 }
  0x27   :  { %223 = vmatpush.msra.mxu2 %v72_v26  ;;  %239 = vmatpush.msra.mxu3 %v73_v27 }
  0x28   :  { %113 = vmatpush.msra.mxu0 %v72_v26  ;;  %142 = vmatpush.msra.mxu1 %v73_v27 }
  0x29   :  { %224 = vmatpush.msra.mxu2 %v70_v28  ;;  %240 = vmatpush.msra.mxu3 %v71_v29 }
  0x2a   :  { %114 = vmatpush.msra.mxu0 %v70_v28  ;;  %143 = vmatpush.msra.mxu1 %v71_v29 }
  0x2b   :  { %225 = vmatpush.msra.mxu2 %v68_v30  ;;  %241 = vmatpush.msra.mxu3 %v69_v31 }
  0x2c   :  { %122 = vmatmul.f32.vlgmr.msra.gmra.mxu2 %v66_v32  ;;  %151 = vmatmul.f32.vlgmr.msra.gmra.mxu3 %v66_v32 }
  0x2d   :  { %115 = vmatpush.msra.mxu0 %v68_v30  ;;  %144 = vmatpush.msra.mxu1 %v69_v31 }
  0x2e   :  { %116 = vmatmul.f32.vlgmr.msra.gmra.mxu0 %v64_v33  ;;  %145 = vmatmul.f32.vlgmr.msra.gmra.mxu1 %v64_v33 }
  0x34   :  { %125 = vmatmul.f32.gmra.mxu2 %v67_v34  ;;  %154 = vmatmul.f32.gmra.mxu3 %v67_v34 }
  0x36   :  { %119 = vmatmul.f32.gmra.mxu0 %v65_v35  ;;  %148 = vmatmul.f32.gmra.mxu1 %v65_v35 }
  0xab   :  { %v117_v36 = vpop.f32.mrf.mxu0  ;;  %v146_v37 = vpop.f32.mrf.mxu1 }
  0xac   :  { %182 = vst [vmem:[#allocation8] sm:$0xff] %v117_v36 }
  0xad   :  { %183 = vst [vmem:[#allocation8 + $0x8] sm:$0xff] %v146_v37 }
  0xaf   :  { %v123_v38 = vpop.f32.mrf.mxu2  ;;  %v152_v39 = vpop.f32.mrf.mxu3 }
  0xb0   :  { %186 = vst [vmem:[#allocation8 + $0x20] sm:$0xff] %v123_v38 }
  0xb1   :  { %187 = vst [vmem:[#allocation8 + $0x28] sm:$0xff] %v152_v39 }
  0xb3   :  { %v120_v40 = vpop.f32.mrf.mxu0  ;;  %v149_v41 = vpop.f32.mrf.mxu1 }
  0xb4   :  { %184 = vst [vmem:[#allocation8 + $0x10] sm:$0xff] %v120_v40 }
  0xb5   :  { %185 = vst [vmem:[#allocation8 + $0x18] sm:$0xff] %v149_v41 }
  0xb7   :  { %v126_v42 = vpop.f32.mrf.mxu2  ;;  %v155_v43 = vpop.f32.mrf.mxu3 }
  0xb8   :  { %188 = vst [vmem:[#allocation8 + $0x30] sm:$0xff] %v126_v42 }
  0xb9   :  { %189 = vst [vmem:[#allocation8 + $0x38] sm:$0xff] %v155_v43 }
  0xba   :  { %202 = dma.vmem_to_hbm [thread:$0]  %s195_s1, 1024, %s197_s25, [#allocation5], %s331_s21, %s331_s21, %s332_s22  }
  0xbb   :  { %325 = dma.done.wait [#allocation5], 1024  }
  0xbc   :  { %326 = vsyncadd [#allocation5], 4294966272 }
  0xbd   :  { %207 = vsyncpa [#allocation4], 1 }
  0xbe   :  { %208 = vsyncpa [#allocation7], 1 }
  0xbf   :  { %209 = vsyncpa [#allocation5], 1 }

</bundles_post_ra>
